<compile_context>
chip_gen: v7x
topology: tpu7x:2x2x1
jax: 0.10.0
libtpu: 0.0.40
codegen_flags: <defaults>
</compile_context>

<pallas_src>
import jax
import jax.numpy as jnp
from jax.experimental import pallas as pl
from jax.experimental.pallas import tpu as pltpu


def _copy_kernel(x_ref, o_ref):
    # Eval-mode dropout == identity: pass the VMEM tile through.
    o_ref[...] = x_ref[...]


_TARGET_BLOCK_BYTES = 4 * 1024 * 1024   # ~4 MiB per block
_VMEM_CAP_BYTES = 48 * 1024 * 1024      # headroom below v7x 64 MiB physical
_LANE = 128


def _identity_copy_pallas(x):
    """Materializing identity copy (lane-dense, aliased, byte-sized blocks)."""
    orig_shape = x.shape
    total = int(x.size)
    if total == 0 or x.ndim == 0:
        return x  # degenerate: nothing to copy

    itemsize = jnp.dtype(x.dtype).itemsize
    # dtype-aware sublane packing: 8 rows for f32, 16 for bf16/f16, 32 for int8.
    packing = max(8, 32 // itemsize)

    # Lane-dense width (multiple of 128) dividing the element count.
    width = None
    for w in (1024, 512, 256, _LANE):
        if total % w == 0:
            width = w
            break

    padded = False
    if width is None:
        # Indivisible size: pad flat up to a multiple of 8*128, copy lane-dense,
        # slice back.  Cheaper than masked sub-128 stores on a narrow last dim.
        width = 8 * _LANE
        padded_total = pl.cdiv(total, width) * width
        flat = jnp.pad(x.reshape(-1), (0, padded_total - total))
        x2d = flat.reshape(padded_total // width, width)
        padded = True
    else:
        x2d = x.reshape(total // width, width)

    rows = x2d.shape[0]
    row_bytes = width * itemsize

    # Byte-sized blocks, sublane(-packing) aligned.
    tile_rows = max(packing, _TARGET_BLOCK_BYTES // row_bytes)
    tile_rows = (tile_rows // packing) * packing
    if tile_rows >= rows:
        if rows >= 2 * packing:
            # Keep >= 2 grid steps so both v7x TensorCores get work.
            half = -(-rows // 2)
            tile_rows = -(-half // packing) * packing
            if tile_rows >= rows:
                tile_rows = max(packing, (rows // (2 * packing)) * packing)
        else:
            tile_rows = rows  # tiny input: single full-extent block

    grid = (pl.cdiv(rows, tile_rows),)
    block_bytes = tile_rows * row_bytes
    # double-buffered input + double-buffered output + headroom
    vmem_limit = min(_VMEM_CAP_BYTES, max(4 * block_bytes + (1 << 20), 4 << 20))

    out2d = pl.pallas_call(
        _copy_kernel,
        out_shape=jax.ShapeDtypeStruct((rows, width), x.dtype),
        grid=grid,
        in_specs=[pl.BlockSpec((tile_rows, width), lambda i: (i, 0))],
        out_specs=pl.BlockSpec((tile_rows, width), lambda i: (i, 0)),
        input_output_aliases={0: 0},
        compiler_params=pltpu.CompilerParams(
            dimension_semantics=("parallel",),
            vmem_limit_bytes=vmem_limit,
        ),
        cost_estimate=pl.CostEstimate(
            flops=0,
            transcendentals=0,
            bytes_accessed=2 * rows * width * itemsize,
        ),
    )(x2d)

    if padded:
        return out2d.reshape(-1)[:total].reshape(orig_shape)
    return out2d.reshape(orig_shape)


def scale_forward(x, p=0.5, inplace=False, materialize=False):
    """Pallas/JAX equivalent of Scale.forward.

    F.dropout(x, p, training=False) is the identity, so the hot path returns
    x with zero HBM traffic.  Set materialize=True to force a fresh buffer via
    the Pallas identity-copy kernel (aliased, lane-dense).
    """
    if p < 0 or p > 1:
        raise ValueError(
            "dropout probability has to be between 0 and 1, but got {}".format(p)
        )
    # TODO(synk): `inplace` has no meaning under JAX's functional semantics.
    if not materialize:
        return x
    return _identity_copy_pallas(x)


if __name__ == "__main__":
    key = jax.random.PRNGKey(0)
    # Small NCHW input consistent with a conv-feature-map consumer.
    x = jax.random.normal(key, (2, 4, 16, 16), dtype=jnp.float32)

    # Hot path: exact identity, no kernel launch.
    y_fast = scale_forward(x, p=0.5, inplace=False)
    assert y_fast is x

    # Pallas path: run the identity-copy kernel once (under jit so the
    # input/output aliasing is resolved by XLA copy-insertion).
    run_kernel = jax.jit(lambda a: scale_forward(a, 0.5, False, materialize=True))
    y = run_kernel(x)
    y = jax.block_until_ready(y)

    assert y.shape == x.shape and y.dtype == x.dtype
    assert bool(jnp.all(y == x))
    print("KERNEL_OK")
</pallas_src>

<mosaic_0001>
module attributes {stable_mosaic.version = 11 : i64} {
  func.func @_copy_kernel(%arg0: i32, %arg1: memref<2x1024xf32, #tpu.memory_space<vmem>>, %arg2: memref<2x1024xf32, #tpu.memory_space<vmem>>) attributes {dimension_semantics = [#tpu.dimension_semantics<parallel>], iteration_bounds = array<i64: 1>, scalar_prefetch = 0 : i64, scratch_operands = 0 : i64, tpu.core_type = #tpu.core_type<tc>, window_params = [{transform_indices = @transform_0, window_bounds = array<i64: 2, 1024>}, {transform_indices = @transform_1, window_bounds = array<i64: 2, 1024>}]} {
    %c0 = arith.constant 0 : index
    %c0_0 = arith.constant 0 : index
    %0 = vector.load %arg1[%c0, %c0_0] : memref<2x1024xf32, #tpu.memory_space<vmem>>, vector<2x1024xf32>
    %c0_1 = arith.constant 0 : index
    %c0_2 = arith.constant 0 : index
    %1 = vector.load %arg2[%c0_1, %c0_2] : memref<2x1024xf32, #tpu.memory_space<vmem>>, vector<2x1024xf32>
    tpu.vector_store %arg2[%c0_1, %c0_2], %0 {strides = array<i32>} : memref<2x1024xf32, #tpu.memory_space<vmem>>, vector<2x1024xf32>,
    return
  }
  func.func @transform_0(%arg0: i32) -> (i32, i32) {
    %c0_i32 = arith.constant 0 : i32
    %c0_i32_0 = arith.constant 0 : i32
    return %arg0, %c0_i32 : i32, i32
  }
  func.func @transform_1(%arg0: i32) -> (i32, i32) {
    %c0_i32 = arith.constant 0 : i32
    %c0_i32_0 = arith.constant 0 : i32
    return %arg0, %c0_i32 : i32, i32
  }
}

</mosaic_0001>

<bundles_post_ra>
// kernel: _lambda_.1
= control target key start
LH: loop header
LB: loop body
LE: loop exit
PB: predicated region body
PF: predicated region fallthrough
CT: control target
= control target key end

     0   :  { %s38_s0 = inlined_call_operand.vmem [shape: f32[2,1024], index: 0, kind: input, shape index: {}, may-alias: {0,1}]   ;;  %s39_s1 = inlined_call_operand.vmem [shape: f32[2,1024], index: 1, kind: output, shape index: {}, may-alias: {0,1}]  }
   0x1   :  { %v8_v0 = vld [vmem:[%s38_s0] sm:$0xff]  ;;  %v9_v1 = vld [vmem:[%s38_s0 + $0x8] sm:$0xff] }
   0x2   :  { %10 = vst [vmem:[%s39_s1] sm:$0xff] %v8_v0  ;;  %11 = vst [vmem:[%s39_s1 + $0x8] sm:$0xff] %v9_v1 }

</bundles_post_ra>
